<compile_context>
chip_gen: v6e
topology: v6e:2x2x1
jax: 0.10.0
libtpu: 0.0.40
codegen_flags: <defaults>
</compile_context>

<pallas_src>
import functools

import jax
import jax.numpy as jnp
from jax.experimental import pallas as pl
from jax.experimental.pallas import tpu as pltpu

UPPER = 0.9
LOWER = 0.1
LMDA = 0.5

_LANE_WIDTH = 512                       # lane-dense tile width (multiple of 128)
_TILE_BUDGET_BYTES = 12 * 1024 * 1024   # per pipeline buffer (x2 for double buffering)
_VMEM_LIMIT_BYTES = 48 * 1024 * 1024    # leaves headroom on v7x's 64 MiB physical VMEM


def _round_up(x, m):
    return (x + m - 1) // m * m


def _dense_sq_sum_kernel(x_ref, out_ref, acc_ref):
    """Accumulates sum(relu(x - LOWER)^2) over the inner ("arbitrary") grid axis."""
    s = pl.program_id(1)

    @pl.when(s == 0)
    def _init():
        acc_ref[...] = jnp.zeros_like(acc_ref)

    x = x_ref[...].astype(jnp.float32)            # (TR, W), upcast AFTER the VMEM load
    r = jnp.maximum(x - LOWER, 0.0)
    # Fold onto a (1, W) lane-vector accumulator: cheap per-step reduction, no SMEM RMW.
    acc_ref[...] += jnp.sum(r * r, axis=0, keepdims=True)

    @pl.when(s == pl.num_programs(1) - 1)
    def _fin():
        # Single cross-lane reduce + SMEM scalar write, once per chunk.
        out_ref[0, 0] = jnp.sum(acc_ref[...])


def _dense_sq_sum(logits, *, lane_width=_LANE_WIDTH,
                  tile_budget_bytes=_TILE_BUDGET_BYTES):
    """sum over ALL elements of relu(logits - LOWER)^2 as a Pallas streaming reduction."""
    n = logits.size
    itemsize = jnp.dtype(logits.dtype).itemsize
    w = max(128, _round_up(lane_width, 128))
    row_align = 16 if itemsize < 4 else 8         # bf16 packs 16 sublanes per vreg

    # Correct VMEM accounting: block bytes are exactly tr * w * itemsize (lane dense).
    tr_max = max(row_align,
                 (tile_budget_bytes // (w * itemsize)) // row_align * row_align)
    rows_needed = pl.cdiv(n, w)

    if rows_needed <= tr_max:
        num_chunks, steps = 1, 1
        tr = _round_up(rows_needed, row_align)
    else:
        num_chunks = 2                            # v7x has 2 TensorCores; harmless on v5e/v6e
        per_chunk = pl.cdiv(rows_needed, num_chunks)
        steps = pl.cdiv(per_chunk, tr_max)
        tr = _round_up(pl.cdiv(per_chunk, steps), row_align)

    total_rows = num_chunks * steps * tr
    n_pad = total_rows * w

    flat = logits.reshape(n)
    if n_pad > n:
        # Zero padding is numerically neutral: relu(0 - LOWER) == 0.
        flat = jnp.concatenate([flat, jnp.zeros((n_pad - n,), dtype=flat.dtype)])
    slab = flat.reshape(total_rows, w)            # lane-dense, fully contiguous blocks

    partials = pl.pallas_call(
        _dense_sq_sum_kernel,
        out_shape=jax.ShapeDtypeStruct((num_chunks, 1), jnp.float32),
        grid_spec=pltpu.PrefetchScalarGridSpec(
            num_scalar_prefetch=0,
            grid=(num_chunks, steps),
            in_specs=[pl.BlockSpec((tr, w), lambda p, s: (p * steps + s, 0))],
            out_specs=pl.BlockSpec((1, 1), lambda p, s: (p, 0),
                                   memory_space=pltpu.SMEM),
            scratch_shapes=[pltpu.VMEM((1, w), jnp.float32)],   # per-chunk accumulator
        ),
        compiler_params=pltpu.CompilerParams(
            dimension_semantics=("parallel", "arbitrary"),
            vmem_limit_bytes=_VMEM_LIMIT_BYTES,
        ),
    )(slab)
    return jnp.sum(partials)


def capsule_loss(logits: jax.Array, labels: jax.Array, *,
                 lane_width=_LANE_WIDTH,
                 tile_budget_bytes=_TILE_BUDGET_BYTES) -> jax.Array:
    """logits: (B, C) float32/bfloat16, labels: (B,) int -> scalar float32 loss."""
    b, c = logits.shape
    if logits.dtype not in (jnp.float32, jnp.bfloat16):
        logits = logits.astype(jnp.float32)

    # Dense term (O(B*C) HBM traffic): Pallas streaming reduction over a lane-dense slab.
    dense_sum = _dense_sq_sum(logits, lane_width=lane_width,
                              tile_budget_bytes=tile_budget_bytes)

    # Labeled-class correction (O(B) work): gather + fixup in plain XLA, per perf review.
    labels_i = labels.astype(jnp.int32).reshape(b, 1)
    sel = jnp.take_along_axis(logits, labels_i, axis=1).astype(jnp.float32)  # (B, 1)
    left_sel = jnp.square(jnp.maximum(UPPER - sel, 0.0))
    right_sel = jnp.square(jnp.maximum(sel - LOWER, 0.0))
    corr_sum = jnp.sum(left_sel - LMDA * right_sel)

    return (LMDA * dense_sum + corr_sum) / b


def _reference(logits, labels):
    logits = logits.astype(jnp.float32)
    left = jnp.maximum(UPPER - logits, 0.0) ** 2
    right = jnp.maximum(logits - LOWER, 0.0) ** 2
    onehot = jax.nn.one_hot(labels, logits.shape[1], dtype=jnp.float32)
    return (jnp.mean(jnp.sum(onehot * left, -1))
            + LMDA * jnp.mean(jnp.sum((1.0 - onehot) * right, -1)))


if __name__ == "__main__":
    key = jax.random.PRNGKey(0)
    k1, k2, k3, k4 = jax.random.split(key, 4)

    # Case 1: typical capsule head (B=8, C=10), f32, single tile.
    b1, c1 = 8, 10
    logits1 = jax.random.uniform(k1, (b1, c1), dtype=jnp.float32)
    labels1 = jax.random.randint(k2, (b1,), 0, c1, dtype=jnp.int32)
    loss1 = capsule_loss(logits1, labels1)
    jax.block_until_ready(loss1)
    ref1 = _reference(logits1, labels1)
    assert jnp.allclose(loss1, ref1, rtol=1e-5, atol=1e-6), (loss1, ref1)

    # Case 2: force a 2-chunk ("parallel") x 2-step grid with ragged zero padding.
    b2, c2 = 64, 33
    logits2 = jax.random.uniform(k3, (b2, c2), minval=-1.0, maxval=1.0,
                                 dtype=jnp.float32)
    labels2 = jax.random.randint(k4, (b2,), 0, c2, dtype=jnp.int32)
    loss2 = capsule_loss(logits2, labels2, lane_width=128,
                         tile_budget_bytes=128 * 4 * 8)   # tiny tiles -> multi-tile grid
    jax.block_until_ready(loss2)
    ref2 = _reference(logits2, labels2)
    assert jnp.allclose(loss2, ref2, rtol=1e-5, atol=1e-6), (loss2, ref2)

    # Case 3: bf16 logits stay bf16 in HBM; kernel upcasts to f32 after the VMEM load.
    logits3 = logits2.astype(jnp.bfloat16)
    loss3 = capsule_loss(logits3, labels2)
    jax.block_until_ready(loss3)
    ref3 = _reference(logits3, labels2)
    assert jnp.allclose(loss3, ref3, rtol=1e-5, atol=1e-6), (loss3, ref3)

    print("KERNEL_OK")
</pallas_src>

<mosaic_0001>
module attributes {stable_mosaic.version = 11 : i64} {
  func.func @_dense_sq_sum_kernel(%arg0: i32, %arg1: i32, %arg2: memref<8x512xf32, #tpu.memory_space<vmem>>, %arg3: memref<1x1xf32, #tpu.memory_space<smem>>, %arg4: memref<1x512xf32, #tpu.memory_space<vmem>>) attributes {dimension_semantics = [#tpu.dimension_semantics<parallel>, #tpu.dimension_semantics<arbitrary>], iteration_bounds = array<i64: 1, 1>, scalar_prefetch = 0 : i64, scratch_operands = 1 : i64, tpu.core_type = #tpu.core_type<tc>, window_params = [{transform_indices = @transform_0, window_bounds = array<i64: 8, 512>}, {transform_indices = @transform_1, window_bounds = array<i64: 1, 1>}]} {
    %c0_i32 = arith.constant 0 : i32
    %0 = arith.cmpi eq, %arg1, %c0_i32 : i32
    %1 = arith.extui %0 : i1 to i32
    %c0_i32_0 = arith.constant 0 : i32
    %2 = arith.cmpi ne, %1, %c0_i32_0 : i32
    scf.if %2 {
      %cst_10 = arith.constant 0.000000e+00 : f32
      %17 = vector.broadcast %cst_10 : f32 to vector<1x512xf32>
      %c0_11 = arith.constant 0 : index
      %c0_12 = arith.constant 0 : index
      %18 = vector.load %arg4[%c0_11, %c0_12] : memref<1x512xf32, #tpu.memory_space<vmem>>, vector<1x512xf32>
      tpu.vector_store %arg4[%c0_11, %c0_12], %17 {strides = array<i32>} : memref<1x512xf32, #tpu.memory_space<vmem>>, vector<1x512xf32>,
    } else {
    }
    %c0 = arith.constant 0 : index
    %c0_1 = arith.constant 0 : index
    %3 = vector.load %arg2[%c0, %c0_1] : memref<8x512xf32, #tpu.memory_space<vmem>>, vector<8x512xf32>
    %cst = arith.constant 1.000000e-01 : f32
    %4 = vector.broadcast %cst : f32 to vector<8x512xf32>
    %5 = arith.subf %3, %4 : vector<8x512xf32>
    %cst_2 = arith.constant 0.000000e+00 : f32
    %6 = vector.broadcast %cst_2 : f32 to vector<8x512xf32>
    %7 = arith.maximumf %5, %6 : vector<8x512xf32>
    %c0_3 = arith.constant 0 : index
    %c0_4 = arith.constant 0 : index
    %8 = vector.load %arg4[%c0_3, %c0_4] : memref<1x512xf32, #tpu.memory_space<vmem>>, vector<1x512xf32>
    %9 = arith.mulf %7, %7 : vector<8x512xf32>
    %cst_5 = arith.constant dense<0.000000e+00> : vector<512xf32>
    %10 = vector.multi_reduction <add>, %9, %cst_5 [0] : vector<8x512xf32> to vector<512xf32>
    %11 = vector.shape_cast %10 : vector<512xf32> to vector<1x512xf32>
    %12 = arith.addf %8, %11 : vector<1x512xf32>
    %c0_6 = arith.constant 0 : index
    %c0_7 = arith.constant 0 : index
    %13 = vector.load %arg4[%c0_6, %c0_7] : memref<1x512xf32, #tpu.memory_space<vmem>>, vector<1x512xf32>
    tpu.vector_store %arg4[%c0_6, %c0_7], %12 {strides = array<i32>} : memref<1x512xf32, #tpu.memory_space<vmem>>, vector<1x512xf32>,
    %c0_i32_8 = arith.constant 0 : i32
    %14 = arith.cmpi eq, %arg1, %c0_i32_8 : i32
    %15 = arith.extui %14 : i1 to i32
    %c0_i32_9 = arith.constant 0 : i32
    %16 = arith.cmpi ne, %15, %c0_i32_9 : i32
    scf.if %16 {
      %c0_10 = arith.constant 0 : index
      %c0_11 = arith.constant 0 : index
      %17 = vector.load %arg4[%c0_10, %c0_11] : memref<1x512xf32, #tpu.memory_space<vmem>>, vector<1x512xf32>
      %18 = vector.shape_cast %17 : vector<1x512xf32> to vector<1x1x512xf32>
      %cst_12 = arith.constant dense<0.000000e+00> : vector<1xf32>
      %19 = vector.multi_reduction <add>, %18, %cst_12 [1, 2] : vector<1x1x512xf32> to vector<1xf32>
      %20 = vector.shape_cast %19 : vector<1xf32> to vector<1x1x1xf32>
      %21 = vector.extract %20[0, 0, 0] : f32 from vector<1x1x1xf32>
      %c0_13 = arith.constant 0 : index
      %c0_14 = arith.constant 0 : index
      %22 = memref.load %arg3[%c0_13, %c0_14] : memref<1x1xf32, #tpu.memory_space<smem>>
      memref.store %21, %arg3[%c0_13, %c0_14] : memref<1x1xf32, #tpu.memory_space<smem>>
    } else {
    }
    return
  }
  func.func @transform_0(%arg0: i32, %arg1: i32) -> (i32, i32) {
    %c1_i32 = arith.constant 1 : i32
    %0 = arith.muli %arg0, %c1_i32 : i32
    %1 = arith.addi %0, %arg1 : i32
    %c0_i32 = arith.constant 0 : i32
    %c0_i32_0 = arith.constant 0 : i32
    return %1, %c0_i32 : i32, i32
  }
  func.func @transform_1(%arg0: i32, %arg1: i32) -> (i32, i32) {
    %c0_i32 = arith.constant 0 : i32
    %c0_i32_0 = arith.constant 0 : i32
    return %arg0, %c0_i32 : i32, i32
  }
}

</mosaic_0001>

<bundles_post_ra>
// kernel: tpu_custom_call.1
= control target key start
LH: loop header
LB: loop body
LE: loop exit
PB: predicated region body
PF: predicated region fallthrough
CT: control target
= control target key end

     0   :  { %6 = vsyncpa [#allocation4], 0  ;;  %s239_s0 = inlined_call_operand.hbm [shape: f32[8,512], index: 0, kind: input, shape index: {}]   ;;  %s240_s1 = inlined_call_operand.hbm [shape: f32[1,1], index: 1, kind: output, shape index: {}]  }
   0x1   :  { %7 = vsyncpa [#allocation5], 0  ;;  %s211_s6 = smov [#allocation3]  }
   0x2   :  { %s18_s7 = sshll.u32 %s211_s6, 4  ;;  %s19_s7 = int_to_ptr.vmem [resolvable:$true] %s18_s7 }
   0x3   :  { %s187_s8 = scalar_lea.vmem %s19_s7, 512  ;;  %p192_p1 = scmp.lt.s32.totalorder %s19_s7, %s19_s7 }
   0x4   :  { %p188_p0 = scmp.ne.s32.totalorder %s19_s7, %s187_s8  ;;  %p193_p2 = scmp.lt.s32.totalorder %s187_s8, %s187_s8 }
   0x6   :  { %p194_p3 = por %p193_p2, %p192_p1 }
   0x8   :  { %p195_p4 = pnand %p194_p3, %p188_p0 }
   0xa   :  { %198 = shalt.err (!%p195_p4)
}
   0xb   :  { %21 = dma.hbm_to_vmem [thread:$0]  %s239_s0, 512, %s19_s7, [#allocation4]  }
   0xc   :  { %207 = dma.done.wait [#allocation4], 512  }
   0xd   :  { %208 = vsyncadd [#allocation4], 4294966784  ;;  %v30_v0 = vlaneseq  ;;  %v212_v2 = vmov 0.0   ;;  %v35_v3 = vld [vmem:[#allocation3] sm:$0xff]  ;;  %v36_v4 = vld [vmem:[#allocation3 + $0x8] sm:$0xff]  ;;  %vm136_vm1 = vcmask 1040384  }
   0xe   :  { %v37_v5 = vld [vmem:[#allocation3 + $0x10] sm:$0xff]  ;;  %v38_v6 = vld [vmem:[#allocation3 + $0x18] sm:$0xff]  ;;  %v169_v7 = vadd.f32 -0.1, %v35_v3  ;;  %v170_v8 = vadd.f32 -0.1, %v36_v4 }
   0xf   :  { %vm228_vm0 = vcmp.lt.s32.totalorder %v30_v0, 512  ;;  %v171_v9 = vadd.f32 -0.1, %v37_v5  ;;  %v172_v10 = vadd.f32 -0.1, %v38_v6  ;;  %v86_v36 = vshrl.u32 %v30_v0, 7 }
  0x10   :  { %34 = vst.msk [vmem:[#allocation2] sm:$0xf] %vm228_vm0, %v212_v2  ;;  %v43_v11 = vmax.f32 %v169_v7, 0.0  ;;  %v44_v12 = vmax.f32 %v170_v8, 0.0  ;;  %v213_v25 = vmov 1966171168  }
  0x11   :  { %v45_v13 = vmax.f32 %v171_v9, 0.0  ;;  %v46_v14 = vmax.f32 %v172_v10, 0.0  ;;  %v83_v26 = vunpack.c.l.s4 %v213_v25  ;;  %v118_v56 = vsub.s32 0, %v86_v36  ;;  %s214_s11 = smov [#allocation6]  }
  0x12   :  { %v48_v15 = vmul.f32 %v43_v11, %v43_v11  ;;  %v49_v16 = vmul.f32 %v44_v12, %v44_v12  ;;  %v122_v57 = vsub.s32 1, %v86_v36  ;;  %v126_v58 = vsub.s32 2, %v86_v36 }
  0x13   :  { %v50_v17 = vmul.f32 %v45_v13, %v45_v13  ;;  %v51_v18 = vmul.f32 %v46_v14, %v46_v14  ;;  %v84_v35 = vunpack.c.0.s8 %v83_v26  ;;  %v130_v59 = vsub.s32 3, %v86_v36 }
  0x14   :  { %v52_v19 = vrot.slane %v48_v15, 4  ;;  %v58_v20 = vrot.slane %v49_v16, 4 }
  0x15   :  { %v64_v21 = vrot.slane %v50_v17, 4  ;;  %v70_v22 = vrot.slane %v51_v18, 4  ;;  %v87_v45 = vsub.s32 %v84_v35, %v86_v36 }
  0x16   :  { %v53_v23 = vadd.f32 %v52_v19, %v48_v15  ;;  %v59_v24 = vadd.f32 %v58_v20, %v49_v16 }
  0x17   :  { %v65_v27 = vadd.f32 %v64_v21, %v50_v17  ;;  %v71_v28 = vadd.f32 %v70_v22, %v51_v18  ;;  %v47_v53 = vld [vmem:[#allocation2] sm:$0xf] }
  0x18   :  { %v54_v29 = vrot.slane %v53_v23, 2  ;;  %v60_v30 = vrot.slane %v59_v24, 2 }
  0x19   :  { %v66_v31 = vrot.slane %v65_v27, 2  ;;  %v72_v32 = vrot.slane %v71_v28, 2 }
  0x1a   :  { %v55_v33 = vadd.f32 %v54_v29, %v53_v23  ;;  %v61_v34 = vadd.f32 %v60_v30, %v59_v24 }
  0x1b   :  { %v67_v37 = vadd.f32 %v66_v31, %v65_v27  ;;  %v73_v38 = vadd.f32 %v72_v32, %v71_v28 }
  0x1c   :  { %v56_v39 = vrot.slane %v55_v33, 1  ;;  %v62_v40 = vrot.slane %v61_v34, 1 }
  0x1d   :  { %v68_v41 = vrot.slane %v67_v37, 1  ;;  %v74_v42 = vrot.slane %v73_v38, 1 }
  0x1e   :  { %v57_v43 = vadd.f32 %v56_v39, %v55_v33  ;;  %v63_v44 = vadd.f32 %v62_v40, %v61_v34 }
  0x1f   :  { %v69_v46 = vadd.f32 %v68_v41, %v67_v37  ;;  %v75_v47 = vadd.f32 %v74_v42, %v73_v38 }
  0x20   :  { %v80_v48 = vcombine.low %v57_v43, %v63_v44 }
  0x21   :  { %v81_v49 = vcombine.low %v69_v46, %v75_v47 }
  0x22   :  { %v88_v50 = vrot.slane %v80_v48, %v87_v45 }
  0x23   :  { %v95_v51 = vrot.slane %v81_v49, %v87_v45 }
  0x25   :  { %v96_v52 = vcombine.low %v88_v50, %v95_v51 }
  0x27   :  { %v103_v54 = vrot.slane %v96_v52, %v87_v45 }
  0x29   :  { %v105_v55 = vadd.f32 %v103_v54, %v47_v53 }
  0x2b   :  { %110 = vst.msk [vmem:[#allocation2] sm:$0xf] %vm228_vm0, %v105_v55 }
  0x32   :  { %v114_v60 = vld [vmem:[#allocation2] sm:$0xf] }
  0x33   :  { %v119_v61 = vrot.slane %v114_v60, %v118_v56  ;;  %v123_v62 = vrot.slane %v114_v60, %v122_v57  ;;  %v127_v63 = vrot.slane %v114_v60, %v126_v58  ;;  %v131_v0 = vrot.slane %v114_v60, %v130_v59 }
  0x35   :  { %v137_v2 = vsel %vm136_vm1, %v119_v61, 0.0  ;;  %v138_v3 = vsel %vm136_vm1, %v123_v62, 0.0  ;;  %v140_v4 = vsel %vm136_vm1, %v127_v63, 0.0  ;;  %v142_v6 = vsel %vm136_vm1, %v131_v0, 0.0 }
  0x36   :  { %v139_v5 = vadd.f32 %v138_v3, %v137_v2 }
  0x38   :  { %v141_v7 = vadd.f32 %v140_v4, %v139_v5 }
  0x3a   :  { %v143_v8 = vadd.f32 %v142_v6, %v141_v7 }
  0x3c   :  { %144 = vadd.xlane.f32.xlu0 %v143_v8 }
  0xc5   :  { %v145_v1 = vpop.xlane.xlu0 %144 }
  0xc6   :  { %v146_v9 = vrot.slane %v145_v1, 4 }
  0xc8   :  { %v147_v10 = vadd.f32 %v146_v9, %v145_v1 }
  0xca   :  { %v148_v11 = vrot.slane %v147_v10, 2 }
  0xcc   :  { %v149_v12 = vadd.f32 %v148_v11, %v147_v10 }
  0xce   :  { %v150_v13 = vrot.slane %v149_v12, 1 }
  0xd0   :  { %v151_v14 = vadd.f32 %v150_v13, %v149_v12 }
  0xd2   :  { %173 = vpush %v151_v14 }
 0x103   :  { %s174_s0 = spop %173 }
 0x104   :  { %154 = sst [smem:[#allocation6]] %s174_s0 }
 0x105   :  { %162 = dma.smem_to_hbm %s214_s11, 16, %s240_s1, [#allocation5]  }
 0x106   :  { %209 = dma.done.wait [#allocation5], 16  }
 0x107   :  { %210 = vsyncadd [#allocation5], 4294967280 }
 0x108   :  { %166 = sfence }
 0x109   :  { %167 = vsyncpa [#allocation4], 1 }
 0x10a   :  { %168 = vsyncpa [#allocation5], 1 }

</bundles_post_ra>
